<compile_context>
chip_gen: v6e
topology: v6e:2x2x1
jax: 0.10.0
libtpu: 0.0.40
codegen_flags: <defaults>
</compile_context>

<pallas_src>
import jax
import jax.numpy as jnp
from jax.experimental import pallas as pl
from jax.experimental.pallas import tpu as pltpu


# --------------------------------- kernel ------------------------------------

def _dsc_kernel(x_ref, wdw_ref, bdw_ref, wp_ref, bp_ref, o_ref):
    # x_ref : (TB, F, L)    float32   activations (NCL, length on lanes)
    # wdw_ref: (F, K)       float32   depthwise weight (PyTorch (F,1,K) squeezed)
    # bdw_ref: (F, 1)       float32   depthwise bias
    # wp_ref : (F, F)       bfloat16  pointwise weight (MXU operand)
    # bp_ref : (F, 1)       float32   pointwise bias
    # o_ref  : (TB, F, Lout) float32
    x = x_ref[...]
    TB = x.shape[0]
    K = wdw_ref.shape[-1]
    Lout = o_ref.shape[-1]

    wdw = wdw_ref[...]                                  # (F, K), load once

    # ---- depthwise conv (groups = F): per-channel K-tap FIR — pure VPU work ----
    acc = x[:, :, 0:Lout] * wdw[:, 0:1]
    for k in range(1, K):                               # static unroll over taps
        acc = acc + x[:, :, k:k + Lout] * wdw[:, k:k + 1]
    y = acc + bdw_ref[...]                              # (TB, F, Lout), f32

    # ---- pointwise 1x1 conv: channel contraction on the MXU (bf16 in, f32 acc) ----
    wp = wp_ref[...]                                    # (F, F) bf16, resident
    bp = bp_ref[...]                                    # (F, 1) f32
    y_bf = y.astype(jnp.bfloat16)
    for b in range(TB):                                 # static unroll over batch tile
        o_ref[b] = (jnp.dot(wp, y_bf[b], preferred_element_type=jnp.float32)
                    + bp).astype(o_ref.dtype)


# --------------------------------- wrapper -----------------------------------

def depthwise_separable_conv1d(x, dw_weight, dw_bias, pw_weight, pw_bias,
                               *, batch_tile=8):
    """PyTorch `depthwise_separable_conv1D.forward` semantics.

    x:          (B, F, L)      input (NCL)
    dw_weight:  (F, 1, K)      Conv1d(F, F, K, groups=F) weight
    dw_bias:    (F,)           its bias
    pw_weight:  (F, F, 1)      Conv1d(F, F, 1) weight
    pw_bias:    (F,)           its bias
    returns:    (B, F, L-K+1)  float32
    """
    B, F, L = x.shape
    K = dw_weight.shape[-1]
    Lout = L - K + 1

    TB = min(batch_tile, B)                      # batch elements per grid step
    pad = (-B) % TB
    xb = jnp.pad(x, ((0, pad), (0, 0), (0, 0))) if pad else x
    Bp = B + pad

    wdw = dw_weight.reshape(F, K).astype(jnp.float32)
    bdw = dw_bias.reshape(F, 1).astype(jnp.float32)
    wp = pw_weight.reshape(F, F).astype(jnp.bfloat16)     # MXU operand in bf16
    bp = pw_bias.reshape(F, 1).astype(jnp.float32)

    out = pl.pallas_call(
        _dsc_kernel,
        out_shape=jax.ShapeDtypeStruct((Bp, F, Lout), jnp.float32),
        grid=(Bp // TB,),
        in_specs=[
            pl.BlockSpec((TB, F, L), lambda i: (i, 0, 0)),   # activations
            pl.BlockSpec((F, K), lambda i: (0, 0)),          # depthwise weight
            pl.BlockSpec((F, 1), lambda i: (0, 0)),          # depthwise bias
            pl.BlockSpec((F, F), lambda i: (0, 0)),          # pointwise weight
            pl.BlockSpec((F, 1), lambda i: (0, 0)),          # pointwise bias
        ],
        out_specs=pl.BlockSpec((TB, F, Lout), lambda i: (i, 0, 0)),
        compiler_params=pltpu.CompilerParams(
            dimension_semantics=("parallel",)),              # v7x: split batch over TCs
    )(xb.astype(jnp.float32), wdw, bdw, wp, bp)

    return out[:B] if pad else out


# ----------------------------------- main ------------------------------------

if __name__ == "__main__":
    key = jax.random.PRNGKey(0)
    k_x, k_dw, k_db, k_pw, k_pb = jax.random.split(key, 5)

    # Small shapes consistent with the module; L chosen so Lout = 128 (lane-dense).
    B, F, K, L = 2, 16, 7, 134
    Lout = L - K + 1

    x = jax.random.normal(k_x, (B, F, L), jnp.float32)
    s_dw = 1.0 / (1 * K) ** 0.5                  # PyTorch Conv1d default init scale
    s_pw = 1.0 / (F * 1) ** 0.5
    dw_w = jax.random.uniform(k_dw, (F, 1, K), jnp.float32, -s_dw, s_dw)
    dw_b = jax.random.uniform(k_db, (F,), jnp.float32, -s_dw, s_dw)
    pw_w = jax.random.uniform(k_pw, (F, F, 1), jnp.float32, -s_pw, s_pw)
    pw_b = jax.random.uniform(k_pb, (F,), jnp.float32, -s_pw, s_pw)

    fwd = jax.jit(lambda xi: depthwise_separable_conv1d(xi, dw_w, dw_b, pw_w, pw_b))
    out = jax.block_until_ready(fwd(x))
    assert out.shape == (B, F, Lout) and out.dtype == jnp.float32
    assert bool(jnp.all(jnp.isfinite(out)))

    # Pure-JAX reference (PyTorch Conv1d semantics), generous tol for bf16 MXU path.
    wdw = dw_w.reshape(F, K)
    y_ref = sum(x[:, :, k:k + Lout] * wdw[:, k][None, :, None] for k in range(K))
    y_ref = y_ref + dw_b[None, :, None]
    o_ref = jnp.einsum("oc,bcl->bol", pw_w.reshape(F, F), y_ref) + pw_b[None, :, None]
    err = float(jnp.max(jnp.abs(out - o_ref)))
    assert bool(jnp.allclose(out, o_ref, rtol=5e-2, atol=5e-2)), f"max abs err {err}"

    print("KERNEL_OK")
</pallas_src>

<mosaic_0001>
module attributes {stable_mosaic.version = 11 : i64} {
  func.func @_dsc_kernel(%arg0: i32, %arg1: memref<2x16x134xf32, #tpu.memory_space<vmem>>, %arg2: memref<16x7xf32, #tpu.memory_space<vmem>>, %arg3: memref<16x1xf32, #tpu.memory_space<vmem>>, %arg4: memref<16x16xbf16, #tpu.memory_space<vmem>>, %arg5: memref<16x1xf32, #tpu.memory_space<vmem>>, %arg6: memref<2x16x128xf32, #tpu.memory_space<vmem>>) attributes {dimension_semantics = [#tpu.dimension_semantics<parallel>], iteration_bounds = array<i64: 1>, scalar_prefetch = 0 : i64, scratch_operands = 0 : i64, tpu.core_type = #tpu.core_type<tc>, window_params = [{transform_indices = @transform_0, window_bounds = array<i64: 2, 16, 134>}, {pipeline_mode = #tpu.pipeline_mode<synchronous>, transform_indices = @transform_1, window_bounds = array<i64: 16, 7>}, {pipeline_mode = #tpu.pipeline_mode<synchronous>, transform_indices = @transform_2, window_bounds = array<i64: 16, 1>}, {pipeline_mode = #tpu.pipeline_mode<synchronous>, transform_indices = @transform_3, window_bounds = array<i64: 16, 16>}, {pipeline_mode = #tpu.pipeline_mode<synchronous>, transform_indices = @transform_4, window_bounds = array<i64: 16, 1>}, {transform_indices = @transform_5, window_bounds = array<i64: 2, 16, 128>}]} {
    %c0 = arith.constant 0 : index
    %c0_0 = arith.constant 0 : index
    %c0_1 = arith.constant 0 : index
    %0 = vector.load %arg1[%c0, %c0_0, %c0_1] : memref<2x16x134xf32, #tpu.memory_space<vmem>>, vector<2x16x134xf32>
    %c0_2 = arith.constant 0 : index
    %c0_3 = arith.constant 0 : index
    %1 = vector.load %arg2[%c0_2, %c0_3] : memref<16x7xf32, #tpu.memory_space<vmem>>, vector<16x7xf32>
    %2 = vector.extract_strided_slice %0 {offsets = [0, 0, 0], sizes = [2, 16, 128], strides = [1, 1, 1]} : vector<2x16x134xf32> to vector<2x16x128xf32>
    %3 = vector.extract_strided_slice %1 {offsets = [0, 0], sizes = [16, 1], strides = [1, 1]} : vector<16x7xf32> to vector<16x1xf32>
    %4 = vector.shape_cast %3 : vector<16x1xf32> to vector<1x16x1xf32>
    %5 = vector.broadcast %4 : vector<1x16x1xf32> to vector<2x16x128xf32>
    %6 = arith.mulf %2, %5 : vector<2x16x128xf32>
    %7 = vector.extract_strided_slice %0 {offsets = [0, 0, 1], sizes = [2, 16, 128], strides = [1, 1, 1]} : vector<2x16x134xf32> to vector<2x16x128xf32>
    %8 = vector.extract_strided_slice %1 {offsets = [0, 1], sizes = [16, 1], strides = [1, 1]} : vector<16x7xf32> to vector<16x1xf32>
    %9 = vector.shape_cast %8 : vector<16x1xf32> to vector<1x16x1xf32>
    %10 = vector.broadcast %9 : vector<1x16x1xf32> to vector<2x16x128xf32>
    %11 = arith.mulf %7, %10 : vector<2x16x128xf32>
    %12 = arith.addf %6, %11 : vector<2x16x128xf32>
    %13 = vector.extract_strided_slice %0 {offsets = [0, 0, 2], sizes = [2, 16, 128], strides = [1, 1, 1]} : vector<2x16x134xf32> to vector<2x16x128xf32>
    %14 = vector.extract_strided_slice %1 {offsets = [0, 2], sizes = [16, 1], strides = [1, 1]} : vector<16x7xf32> to vector<16x1xf32>
    %15 = vector.shape_cast %14 : vector<16x1xf32> to vector<1x16x1xf32>
    %16 = vector.broadcast %15 : vector<1x16x1xf32> to vector<2x16x128xf32>
    %17 = arith.mulf %13, %16 : vector<2x16x128xf32>
    %18 = arith.addf %12, %17 : vector<2x16x128xf32>
    %19 = vector.extract_strided_slice %0 {offsets = [0, 0, 3], sizes = [2, 16, 128], strides = [1, 1, 1]} : vector<2x16x134xf32> to vector<2x16x128xf32>
    %20 = vector.extract_strided_slice %1 {offsets = [0, 3], sizes = [16, 1], strides = [1, 1]} : vector<16x7xf32> to vector<16x1xf32>
    %21 = vector.shape_cast %20 : vector<16x1xf32> to vector<1x16x1xf32>
    %22 = vector.broadcast %21 : vector<1x16x1xf32> to vector<2x16x128xf32>
    %23 = arith.mulf %19, %22 : vector<2x16x128xf32>
    %24 = arith.addf %18, %23 : vector<2x16x128xf32>
    %25 = vector.extract_strided_slice %0 {offsets = [0, 0, 4], sizes = [2, 16, 128], strides = [1, 1, 1]} : vector<2x16x134xf32> to vector<2x16x128xf32>
    %26 = vector.extract_strided_slice %1 {offsets = [0, 4], sizes = [16, 1], strides = [1, 1]} : vector<16x7xf32> to vector<16x1xf32>
    %27 = vector.shape_cast %26 : vector<16x1xf32> to vector<1x16x1xf32>
    %28 = vector.broadcast %27 : vector<1x16x1xf32> to vector<2x16x128xf32>
    %29 = arith.mulf %25, %28 : vector<2x16x128xf32>
    %30 = arith.addf %24, %29 : vector<2x16x128xf32>
    %31 = vector.extract_strided_slice %0 {offsets = [0, 0, 5], sizes = [2, 16, 128], strides = [1, 1, 1]} : vector<2x16x134xf32> to vector<2x16x128xf32>
    %32 = vector.extract_strided_slice %1 {offsets = [0, 5], sizes = [16, 1], strides = [1, 1]} : vector<16x7xf32> to vector<16x1xf32>
    %33 = vector.shape_cast %32 : vector<16x1xf32> to vector<1x16x1xf32>
    %34 = vector.broadcast %33 : vector<1x16x1xf32> to vector<2x16x128xf32>
    %35 = arith.mulf %31, %34 : vector<2x16x128xf32>
    %36 = arith.addf %30, %35 : vector<2x16x128xf32>
    %37 = vector.extract_strided_slice %0 {offsets = [0, 0, 6], sizes = [2, 16, 128], strides = [1, 1, 1]} : vector<2x16x134xf32> to vector<2x16x128xf32>
    %38 = vector.extract_strided_slice %1 {offsets = [0, 6], sizes = [16, 1], strides = [1, 1]} : vector<16x7xf32> to vector<16x1xf32>
    %39 = vector.shape_cast %38 : vector<16x1xf32> to vector<1x16x1xf32>
    %40 = vector.broadcast %39 : vector<1x16x1xf32> to vector<2x16x128xf32>
    %41 = arith.mulf %37, %40 : vector<2x16x128xf32>
    %42 = arith.addf %36, %41 : vector<2x16x128xf32>
    %c0_4 = arith.constant 0 : index
    %c0_5 = arith.constant 0 : index
    %43 = vector.load %arg3[%c0_4, %c0_5] : memref<16x1xf32, #tpu.memory_space<vmem>>, vector<16x1xf32>
    %44 = vector.shape_cast %43 : vector<16x1xf32> to vector<1x16x1xf32>
    %45 = vector.broadcast %44 : vector<1x16x1xf32> to vector<2x16x128xf32>
    %46 = arith.addf %42, %45 : vector<2x16x128xf32>
    %c0_6 = arith.constant 0 : index
    %c0_7 = arith.constant 0 : index
    %47 = vector.load %arg4[%c0_6, %c0_7] : memref<16x16xbf16, #tpu.memory_space<vmem>>, vector<16x16xbf16>
    %c0_8 = arith.constant 0 : index
    %c0_9 = arith.constant 0 : index
    %48 = vector.load %arg5[%c0_8, %c0_9] : memref<16x1xf32, #tpu.memory_space<vmem>>, vector<16x1xf32>
    %49 = arith.truncf %46 : vector<2x16x128xf32> to vector<2x16x128xbf16>
    %50 = vector.extract_strided_slice %49 {offsets = [0, 0, 0], sizes = [1, 16, 128], strides = [1, 1, 1]} : vector<2x16x128xbf16> to vector<1x16x128xbf16>
    %51 = vector.shape_cast %50 : vector<1x16x128xbf16> to vector<16x128xbf16>
    %cst = arith.constant dense<0.000000e+00> : vector<16x128xf32>
    %52 = tpu.matmul %47, %51, %cst {dimension_numbers = #tpu.dot_dimension_numbers<[1], [0], [0], [1], [0, 0, 1, 1], [], []>} : vector<16x16xbf16>, vector<16x128xbf16>, vector<16x128xf32> -> vector<16x128xf32>
    %53 = vector.broadcast %48 : vector<16x1xf32> to vector<16x128xf32>
    %54 = arith.addf %52, %53 : vector<16x128xf32>
    %c0_10 = arith.constant 0 : index
    %c0_11 = arith.constant 0 : index
    %c0_12 = arith.constant 0 : index
    %55 = vector.load %arg6[%c0_10, %c0_11, %c0_12] : memref<2x16x128xf32, #tpu.memory_space<vmem>>, vector<1x16x128xf32>
    %56 = vector.shape_cast %55 : vector<1x16x128xf32> to vector<16x128xf32>
    %57 = vector.shape_cast %54 : vector<16x128xf32> to vector<1x16x128xf32>
    tpu.vector_store %arg6[%c0_10, %c0_11, %c0_12], %57 {strides = array<i32>} : memref<2x16x128xf32, #tpu.memory_space<vmem>>, vector<1x16x128xf32>,
    %58 = vector.extract_strided_slice %49 {offsets = [1, 0, 0], sizes = [1, 16, 128], strides = [1, 1, 1]} : vector<2x16x128xbf16> to vector<1x16x128xbf16>
    %59 = vector.shape_cast %58 : vector<1x16x128xbf16> to vector<16x128xbf16>
    %cst_13 = arith.constant dense<0.000000e+00> : vector<16x128xf32>
    %60 = tpu.matmul %47, %59, %cst_13 {dimension_numbers = #tpu.dot_dimension_numbers<[1], [0], [0], [1], [0, 0, 1, 1], [], []>} : vector<16x16xbf16>, vector<16x128xbf16>, vector<16x128xf32> -> vector<16x128xf32>
    %61 = vector.broadcast %48 : vector<16x1xf32> to vector<16x128xf32>
    %62 = arith.addf %60, %61 : vector<16x128xf32>
    %c1 = arith.constant 1 : index
    %c0_14 = arith.constant 0 : index
    %c0_15 = arith.constant 0 : index
    %63 = vector.load %arg6[%c1, %c0_14, %c0_15] : memref<2x16x128xf32, #tpu.memory_space<vmem>>, vector<1x16x128xf32>
    %64 = vector.shape_cast %63 : vector<1x16x128xf32> to vector<16x128xf32>
    %65 = vector.shape_cast %62 : vector<16x128xf32> to vector<1x16x128xf32>
    tpu.vector_store %arg6[%c1, %c0_14, %c0_15], %65 {strides = array<i32>} : memref<2x16x128xf32, #tpu.memory_space<vmem>>, vector<1x16x128xf32>,
    return
  }
  func.func @transform_0(%arg0: i32) -> (i32, i32, i32) {
    %c0_i32 = arith.constant 0 : i32
    %c0_i32_0 = arith.constant 0 : i32
    %c0_i32_1 = arith.constant 0 : i32
    return %arg0, %c0_i32, %c0_i32_0 : i32, i32, i32
  }
  func.func @transform_1(%arg0: i32) -> (i32, i32) {
    %c0_i32 = arith.constant 0 : i32
    %c0_i32_0 = arith.constant 0 : i32
    %c0_i32_1 = arith.constant 0 : i32
    return %c0_i32, %c0_i32_0 : i32, i32
  }
  func.func @transform_2(%arg0: i32) -> (i32, i32) {
    %c0_i32 = arith.constant 0 : i32
    %c0_i32_0 = arith.constant 0 : i32
    %c0_i32_1 = arith.constant 0 : i32
    return %c0_i32, %c0_i32_0 : i32, i32
  }
  func.func @transform_3(%arg0: i32) -> (i32, i32) {
    %c0_i32 = arith.constant 0 : i32
    %c0_i32_0 = arith.constant 0 : i32
    %c0_i32_1 = arith.constant 0 : i32
    return %c0_i32, %c0_i32_0 : i32, i32
  }
  func.func @transform_4(%arg0: i32) -> (i32, i32) {
    %c0_i32 = arith.constant 0 : i32
    %c0_i32_0 = arith.constant 0 : i32
    %c0_i32_1 = arith.constant 0 : i32
    return %c0_i32, %c0_i32_0 : i32, i32
  }
  func.func @transform_5(%arg0: i32) -> (i32, i32, i32) {
    %c0_i32 = arith.constant 0 : i32
    %c0_i32_0 = arith.constant 0 : i32
    %c0_i32_1 = arith.constant 0 : i32
    return %arg0, %c0_i32, %c0_i32_0 : i32, i32, i32
  }
}

</mosaic_0001>

<bundles_post_ra>
// kernel: _lambda_.1
= control target key start
LH: loop header
LB: loop body
LE: loop exit
PB: predicated region body
PF: predicated region fallthrough
CT: control target
= control target key end

     0   :  { %10 = vsyncpa [#allocation3], 0  ;;  %s990_s0 = inlined_call_operand.hbm [shape: f32[2,16,134], index: 0, kind: input, shape index: {}]   ;;  %s991_s1 = inlined_call_operand.hbm [shape: f32[16,7], index: 1, kind: input, shape index: {}]   ;;  %s992_s2 = inlined_call_operand.hbm [shape: f32[16,1], index: 2, kind: input, shape index: {}]   ;;  %s993_s3 = inlined_call_operand.hbm [shape: bf16[16,16], index: 3, kind: input, shape index: {}]   ;;  %s994_s4 = inlined_call_operand.hbm [shape: f32[16,1], index: 4, kind: input, shape index: {}]   ;;  %s995_s5 = inlined_call_operand.hbm [shape: f32[2,16,128], index: 5, kind: output, shape index: {}]  }
   0x1   :  { %11 = vsyncpa [#allocation6], 0 }
   0x2   :  { %12 = vsyncpa [#allocation9], 0 }
   0x3   :  { %13 = vsyncpa [#allocation4], 0  ;;  %s765_s18 = smov [#allocation5]  }
   0x4   :  { %s31_s19 = sshll.u32 %s765_s18, 4  ;;  %s32_s19 = int_to_ptr.vmem [resolvable:$true] %s31_s19 }
   0x5   :  { %s645_s20 = scalar_lea.vmem %s32_s19, 256  ;;  %p650_p1 = scmp.lt.s32.totalorder %s32_s19, %s32_s19 }
   0x6   :  { %p646_p0 = scmp.ne.s32.totalorder %s32_s19, %s645_s20  ;;  %p651_p2 = scmp.lt.s32.totalorder %s645_s20, %s645_s20 }
   0x8   :  { %p652_p3 = por %p651_p2, %p650_p1 }
   0xa   :  { %p653_p4 = pnand %p652_p3, %p646_p0 }
   0xc   :  { %656 = shalt.err (!%p653_p4)
}
   0xd   :  { %s766_s21 = smov 128   ;;  %s767_s22 = smov 8  }
   0xe   :  { %37 = dma.hbm_to_vmem [thread:$0]  %s991_s1, 256, %s32_s19, [#allocation6], %s766_s21, %s766_s21, %s767_s22  }
   0xf   :  { %s768_s25 = smov [#allocation8]  }
  0x10   :  { %s55_s26 = sshll.u32 %s768_s25, 4  ;;  %s56_s26 = int_to_ptr.vmem [resolvable:$true] %s55_s26 }
  0x11   :  { %s665_s27 = scalar_lea.vmem %s56_s26, 128  ;;  %p670_p6 = scmp.lt.s32.totalorder %s56_s26, %s56_s26 }
  0x12   :  { %p666_p5 = scmp.ne.s32.totalorder %s56_s26, %s665_s27  ;;  %p671_p7 = scmp.lt.s32.totalorder %s665_s27, %s665_s27 }
  0x14   :  { %p672_p8 = por %p671_p7, %p670_p6 }
  0x16   :  { %p673_p9 = pnand %p672_p8, %p666_p5 }
  0x18   :  { %676 = shalt.err (!%p673_p9)
}
  0x19   :  { %s769_s28 = smov 64   ;;  %s770_s29 = smov 4  }
  0x1a   :  { %61 = dma.hbm_to_vmem [thread:$0]  %s993_s3, 128, %s56_s26, [#allocation9], %s769_s28, %s769_s28, %s770_s29  }
  0x1b   :  { %s771_s7 = smov [#allocation2]  }
  0x1c   :  { %s19_s8 = sshll.u32 %s771_s7, 4  ;;  %s20_s8 = int_to_ptr.vmem [resolvable:$true] %s19_s8 }
  0x1d   :  { %s685_s1 = scalar_lea.vmem %s20_s8, 1024  ;;  %p690_p11 = scmp.lt.s32.totalorder %s20_s8, %s20_s8 }
  0x1e   :  { %p686_p10 = scmp.ne.s32.totalorder %s20_s8, %s685_s1  ;;  %p691_p12 = scmp.lt.s32.totalorder %s685_s1, %s685_s1 }
  0x20   :  { %p692_p13 = por %p691_p12, %p690_p11 }
  0x22   :  { %p693_p0 = pnand %p692_p13, %p686_p10 }
  0x24   :  { %696 = shalt.err (!%p693_p0)
}
  0x25   :  { %s772_s9 = smov 256   ;;  %s773_s10 = smov 16  }
  0x26   :  { %25 = dma.hbm_to_vmem [thread:$0]  %s990_s0, 1024, %s20_s8, [#allocation3], %s772_s9, %s772_s9, %s773_s10  }
  0x27   :  { %s774_s13 = smov [#allocation7]   ;;  %s775_s3 = smov [#allocation10]  }
  0x28   :  { %s43_s14 = sshll.u32 %s774_s13, 4  ;;  %s67_s15 = sshll.u32 %s775_s3, 4  ;;  %s44_s14 = int_to_ptr.vmem [resolvable:$true] %s43_s14  ;;  %s68_s15 = int_to_ptr.vmem [resolvable:$true] %s67_s15 }
  0x29   :  { %s705_s16 = scalar_lea.vmem %s44_s14, 256  ;;  %p710_p2 = scmp.lt.s32.totalorder %s44_s14, %s44_s14 }
  0x2a   :  { %p706_p1 = scmp.ne.s32.totalorder %s44_s14, %s705_s16  ;;  %p711_p3 = scmp.lt.s32.totalorder %s705_s16, %s705_s16 }
  0x2c   :  { %p712_p4 = por %p711_p3, %p710_p2 }
  0x2e   :  { %p713_p5 = pnand %p712_p4, %p706_p1 }
  0x30   :  { %716 = shalt.err (!%p713_p5)
}
  0x31   :  { %49 = dma.hbm_to_vmem [thread:$0]  %s992_s2, 256, %s44_s14, [#allocation6], %s766_s21, %s766_s21, %s767_s22  }
  0x32   :  { %s725_s0 = scalar_lea.vmem %s68_s15, 256  ;;  %p730_p7 = scmp.lt.s32.totalorder %s68_s15, %s68_s15 }
  0x33   :  { %p726_p6 = scmp.ne.s32.totalorder %s68_s15, %s725_s0  ;;  %p731_p8 = scmp.lt.s32.totalorder %s725_s0, %s725_s0 }
  0x35   :  { %p732_p9 = por %p731_p8, %p730_p7 }
  0x37   :  { %p733_p10 = pnand %p732_p9, %p726_p6 }
  0x39   :  { %736 = shalt.err (!%p733_p10)
}
  0x3a   :  { %73 = dma.hbm_to_vmem [thread:$0]  %s994_s4, 256, %s68_s15, [#allocation9], %s766_s21, %s766_s21, %s767_s22  }
  0x3b   :  { %757 = dma.done.wait [#allocation3], 1024  }
  0x3c   :  { %758 = vsyncadd [#allocation3], 4294966272 }
  0x3d   :  { %759 = dma.done.wait [#allocation6], 512  }
  0x3e   :  { %760 = vsyncadd [#allocation6], 4294966784 }
  0x3f   :  { %761 = dma.done.wait [#allocation9], 384  }
  0x40   :  { %762 = vsyncadd [#allocation9], 4294966912  ;;  %v776_v0 = vmov 1   ;;  %v777_v1 = vmov 2   ;;  %v98_v2 = vld [vmem:[#allocation5] sm:$0xff]  ;;  %v99_v3 = vld [vmem:[#allocation5 + $0x8] sm:$0xff] }
  0x41   :  { %625 = vset.pattern.permute.xlu0 %v776_v0  ;;  %626 = vset.pattern.permute.xlu1 %v777_v1  ;;  %v778_v4 = vmov 3   ;;  %v779_v5 = vmov 4   ;;  %v780_v6 = vmov 5   ;;  %v781_v7 = vmov 6   ;;  %v432_v9 = vld [vmem:[#allocation7] sm:$0xff]  ;;  %v433_v10 = vld [vmem:[#allocation7 + $0x8] sm:$0xff] }
  0x42   :  { %115 = vperm.xlu0 %625, %v98_v2   ;;  %168 = vperm.xlu1 %626, %v98_v2   ;;  %v782_v8 = vmov 0   ;;  %v846_v11 = vld [vmem:[#allocation2] sm:$0xff]  ;;  %v849_v15 = vld [vmem:[#allocation2 + $0x10] sm:$0xff]  ;;  %v851_v16 = vld [vmem:[#allocation2 + $0x8] sm:$0xff]  ;;  %s783_s2 = smov 127   ;;  %s784_s4 = smov 126  }
  0x43   :  { %v855_v20 = vld [vmem:[#allocation2 + $0x20] sm:$0xff]  ;;  %v857_v21 = vld [vmem:[#allocation2 + $0x18] sm:$0xff]  ;;  %v861_v25 = vld [vmem:[#allocation2 + $0x30] sm:$0xff]  ;;  %s785_s23 = smov 125   ;;  %s786_s24 = smov 124   ;;  %vm790_vm0 = vmmov 0  }
  0x44   :  { %v863_v26 = vld [vmem:[#allocation2 + $0x28] sm:$0xff]  ;;  %v867_v31 = vld [vmem:[#allocation2 + $0x38] sm:$0xff]  ;;  %s787_s25 = smov 123   ;;  %s788_s26 = smov 122   ;;  %vm154_vm1 = vcmask 1039360   ;;  %vm207_vm2 = vcmask 1031168  }
  0x45   :  { %vm260_vm3 = vcmask 1022976   ;;  %vm313_vm4 = vcmask 1014784   ;;  %vm366_vm5 = vcmask 1006592   ;;  %vm419_vm6 = vcmask 998400   ;;  %s791_s27 = smov [#allocation11]  }
  0x46   :  { %119 = vperm.xlu0 %625, %v99_v3   ;;  %172 = vperm.xlu1 %626, %v99_v3   ;;  %vm469_vm7 = vcmask 130048   ;;  %s565_s28 = sshll.u32 %s791_s27, 4  ;;  %s566_s28 = int_to_ptr.vmem [resolvable:$true] %s565_s28 }
  0x47   :  { %s737_s29 = scalar_lea.vmem %s566_s28, 512  ;;  %p742_p12 = scmp.lt.s32.totalorder %s566_s28, %s566_s28 }
  0x48   :  { %p738_p11 = scmp.ne.s32.totalorder %s566_s28, %s737_s29  ;;  %p743_p13 = scmp.lt.s32.totalorder %s737_s29, %s737_s29 }
  0x4a   :  { %627 = vset.pattern.permute.xlu0 %v778_v4  ;;  %628 = vset.pattern.permute.xlu1 %v778_v4  ;;  %p744_p0 = por %p743_p13, %p742_p12 }
  0x4b   :  { %221 = vperm.xlu0 %627, %v98_v2   ;;  %225 = vperm.xlu1 %628, %v99_v3  }
  0x4c   :  { %p745_p1 = pnand %p744_p0, %p738_p11 }
  0x4f   :  { %629 = vset.pattern.permute.xlu1 %v779_v5  ;;  %630 = vset.pattern.permute.xlu0 %v779_v5 }
  0x50   :  { %274 = vperm.xlu1 %629, %v98_v2   ;;  %278 = vperm.xlu0 %630, %v99_v3  }
  0x54   :  { %631 = vset.pattern.permute.xlu1 %v780_v6  ;;  %632 = vset.pattern.permute.xlu0 %v781_v7 }
  0x55   :  { %327 = vperm.xlu1 %631, %v98_v2   ;;  %380 = vperm.xlu0 %632, %v98_v2  }
  0x59   :  { %331 = vperm.xlu1 %631, %v99_v3   ;;  %635 = vset.pattern.permute.xlu0 %v782_v8 }
  0x5a   :  { %107 = vperm.xlu0 %635, %v99_v3  }
  0x5d   :  { %633 = vset.pattern.permute.xlu1 %v781_v7 }
  0x5e   :  { %384 = vperm.xlu1 %633, %v99_v3   ;;  %436 = vperm.xlu0 %635, %v432_v9  }
  0x62   :  { %634 = vset.pattern.permute.xlu1 %v782_v8 }
  0x63   :  { %102 = vperm.xlu1 %634, %v98_v2  }
  0x67   :  { %441 = vperm.xlu1 %634, %v433_v10  }
  0xbd   :  { %v116_v12 = vpop.permute.xlu0 %115  ;;  %v169_v14 = vpop.permute.xlu1 %168 }
  0xbe   :  { %v122_v13 = vmul.f32 %v116_v12, %v846_v11  ;;  %v123_v19 = vmul.f32 %v116_v12, %v851_v16  ;;  %v126_v23 = vmul.f32 %v116_v12, %v855_v20  ;;  %v127_v30 = vmul.f32 %v116_v12, %v863_v26 }
  0xbf   :  { %v175_v32 = vmul.f32 %v169_v14, %v846_v11  ;;  %v176_v37 = vmul.f32 %v169_v14, %v851_v16  ;;  %v179_v41 = vmul.f32 %v169_v14, %v855_v20  ;;  %v180_v47 = vmul.f32 %v169_v14, %v863_v26 }
  0xc0   :  { %138 = vrot.lane.b32.xlu1 %v122_v13, %s783_s2 }
  0xc1   :  { %v120_v17 = vpop.permute.xlu0 %119  ;;  %v173_v22 = vpop.permute.xlu1 %172 }
  0xc2   :  { %v124_v18 = vmul.f32 %v120_v17, %v849_v15  ;;  %v125_v24 = vmul.f32 %v120_v17, %v857_v21  ;;  %v128_v29 = vmul.f32 %v120_v17, %v861_v25  ;;  %v129_v35 = vmul.f32 %v120_v17, %v867_v31 }
  0xc3   :  { %v177_v36 = vmul.f32 %v173_v22, %v849_v15  ;;  %v178_v42 = vmul.f32 %v173_v22, %v857_v21  ;;  %v181_v46 = vmul.f32 %v173_v22, %v861_v25  ;;  %v182_v50 = vmul.f32 %v173_v22, %v867_v31 }
  0xc4   :  { %142 = vrot.lane.b32.xlu0 %v124_v18, %s783_s2  ;;  %140 = vrot.lane.b32.xlu1 %v123_v19, %s783_s2  ;;  %v789_v19 = vmov 0.0  }
  0xc5   :  { %586 = vmatprep.subr.bf16.mxu0 %v789_v19  ;;  %592 = vmatprep.subr.bf16.mxu1 %v789_v19 }
  0xc6   :  { %v226_v27 = vpop.permute.xlu1 %225  ;;  %v222_v28 = vpop.permute.xlu0 %221  ;;  %588 = vmatprep.mubr.msk.bf16.mxu0 %vm790_vm0, %v789_v19  ;;  %594 = vmatprep.mubr.msk.bf16.mxu1 %vm790_vm0, %v789_v19 }
  0xc7   :  { %v228_v49 = vmul.f32 %v222_v28, %v846_v11  ;;  %v230_v54 = vmul.f32 %v226_v27, %v849_v15  ;;  %v229_v55 = vmul.f32 %v222_v28, %v851_v16  ;;  %v231_v56 = vmul.f32 %v226_v27, %v857_v21 }
  0xc8   :  { %146 = vrot.lane.b32.xlu0 %v126_v23, %s783_s2  ;;  %144 = vrot.lane.b32.xlu1 %v125_v24, %s783_s2  ;;  %v232_v57 = vmul.f32 %v222_v28, %v855_v20  ;;  %v234_v58 = vmul.f32 %v226_v27, %v861_v25  ;;  %v233_v59 = vmul.f32 %v222_v28, %v863_v26  ;;  %v450_v23 = vld [vmem:[#allocation10] sm:$0xff]  ;;  %v451_v24 = vld [vmem:[#allocation10 + $0x8] sm:$0xff] }
  0xc9   :  { %v235_v61 = vmul.f32 %v226_v27, %v867_v31 }
  0xcb   :  { %v275_v33 = vpop.permute.xlu1 %274  ;;  %v279_v34 = vpop.permute.xlu0 %278 }
  0xcc   :  { %150 = vrot.lane.b32.xlu0 %v128_v29, %s783_s2  ;;  %148 = vrot.lane.b32.xlu1 %v127_v30, %s783_s2  ;;  %v281_v60 = vmul.f32 %v275_v33, %v846_v11  ;;  %v283_v62 = vmul.f32 %v279_v34, %v849_v15  ;;  %v282_v63 = vmul.f32 %v275_v33, %v851_v16 }
  0xcd   :  { %v284_v0 = vmul.f32 %v279_v34, %v857_v21  ;;  %v285_v1 = vmul.f32 %v275_v33, %v855_v20  ;;  %v287_v2 = vmul.f32 %v279_v34, %v861_v25  ;;  %v286_v3 = vmul.f32 %v275_v33, %v863_v26 }
  0xce   :  { %v288_v5 = vmul.f32 %v279_v34, %v867_v31 }
  0xd0   :  { %191 = vrot.lane.b32.xlu0 %v175_v32, %s784_s4  ;;  %152 = vrot.lane.b32.xlu1 %v129_v35, %s783_s2  ;;  %v873_v38 = vpop.permute.xlu1 %327  ;;  %v875_v39 = vpop.permute.xlu0 %380 }
  0xd1   :  { %v334_v4 = vmul.f32 %v873_v38, %v846_v11  ;;  %v335_v7 = vmul.f32 %v873_v38, %v851_v16  ;;  %v338_v8 = vmul.f32 %v873_v38, %v855_v20  ;;  %v339_v12 = vmul.f32 %v873_v38, %v863_v26 }
  0xd2   :  { %v387_v13 = vmul.f32 %v875_v39, %v846_v11  ;;  %v388_v18 = vmul.f32 %v875_v39, %v851_v16  ;;  %v391_v22 = vmul.f32 %v875_v39, %v855_v20  ;;  %v392_v16 = vmul.f32 %v875_v39, %v863_v26 }
  0xd4   :  { %195 = vrot.lane.b32.xlu0 %v177_v36, %s784_s4  ;;  %193 = vrot.lane.b32.xlu1 %v176_v37, %s784_s4  ;;  %v879_v43 = vpop.permute.xlu1 %331 }
  0xd5   :  { %v108_v40 = vpop.permute.xlu0 %107  ;;  %v336_v6 = vmul.f32 %v879_v43, %v849_v15  ;;  %v337_v9 = vmul.f32 %v879_v43, %v857_v21  ;;  %v340_v10 = vmul.f32 %v879_v43, %v861_v25  ;;  %v341_v14 = vmul.f32 %v879_v43, %v867_v31 }
  0xd6   :  { %v882_v44 = vmul.f32 %v108_v40, %v849_v15  ;;  %v885_v45 = vmul.f32 %v108_v40, %v861_v25 }
  0xd8   :  { %199 = vrot.lane.b32.xlu0 %v179_v41, %s784_s4  ;;  %197 = vrot.lane.b32.xlu1 %v178_v42, %s784_s4 }
  0xd9   :  { %v889_v48 = vpop.permute.xlu1 %384 }
  0xda   :  { %v389_v17 = vmul.f32 %v889_v48, %v849_v15  ;;  %v393_v15 = vmul.f32 %v889_v48, %v861_v25 }
  0xdc   :  { %203 = vrot.lane.b32.xlu0 %v181_v46, %s784_s4  ;;  %201 = vrot.lane.b32.xlu1 %v180_v47, %s784_s4 }
  0xde   :  { %v103_v51 = vpop.permute.xlu1 %102 }
  0xdf   :  { %v894_v52 = vmul.f32 %v103_v51, %v846_v11  ;;  %v897_v53 = vmul.f32 %v103_v51, %v855_v20  ;;  %v390_v11 = vmul.f32 %v889_v48, %v857_v21  ;;  %v394_v21 = vmul.f32 %v889_v48, %v867_v31  ;;  %v948_v20 = vpop.permute.xlu0 %436 }
  0xe0   :  { %244 = vrot.lane.b32.xlu0 %v228_v49, %s785_s23  ;;  %205 = vrot.lane.b32.xlu1 %v182_v50, %s784_s4 }
  0xe2   :  { %v946_v27 = vpop.permute.xlu1 %441 }
  0xe4   :  { %248 = vrot.lane.b32.xlu0 %v230_v54, %s785_s23  ;;  %246 = vrot.lane.b32.xlu1 %v229_v55, %s785_s23 }
  0xe8   :  { %252 = vrot.lane.b32.xlu0 %v232_v57, %s785_s23  ;;  %250 = vrot.lane.b32.xlu1 %v231_v56, %s785_s23 }
  0xec   :  { %256 = vrot.lane.b32.xlu0 %v234_v58, %s785_s23  ;;  %254 = vrot.lane.b32.xlu1 %v233_v59, %s785_s23 }
  0xf0   :  { %297 = vrot.lane.b32.xlu0 %v281_v60, %s786_s24  ;;  %258 = vrot.lane.b32.xlu1 %v235_v61, %s785_s23 }
  0xf4   :  { %301 = vrot.lane.b32.xlu0 %v283_v62, %s786_s24  ;;  %299 = vrot.lane.b32.xlu1 %v282_v63, %s786_s24 }
  0xf8   :  { %305 = vrot.lane.b32.xlu0 %v285_v1, %s786_s24  ;;  %303 = vrot.lane.b32.xlu1 %v284_v0, %s786_s24 }
  0xfc   :  { %309 = vrot.lane.b32.xlu0 %v287_v2, %s786_s24  ;;  %307 = vrot.lane.b32.xlu1 %v286_v3, %s786_s24 }
 0x100   :  { %350 = vrot.lane.b32.xlu0 %v334_v4, %s787_s25  ;;  %311 = vrot.lane.b32.xlu1 %v288_v5, %s786_s24 }
 0x104   :  { %354 = vrot.lane.b32.xlu0 %v336_v6, %s787_s25  ;;  %352 = vrot.lane.b32.xlu1 %v335_v7, %s787_s25 }
 0x108   :  { %358 = vrot.lane.b32.xlu0 %v338_v8, %s787_s25  ;;  %356 = vrot.lane.b32.xlu1 %v337_v9, %s787_s25 }
 0x10c   :  { %362 = vrot.lane.b32.xlu0 %v340_v10, %s787_s25  ;;  %360 = vrot.lane.b32.xlu1 %v339_v12, %s787_s25 }
 0x110   :  { %403 = vrot.lane.b32.xlu0 %v387_v13, %s788_s26  ;;  %364 = vrot.lane.b32.xlu1 %v341_v14, %s787_s25 }
 0x114   :  { %407 = vrot.lane.b32.xlu0 %v389_v17, %s788_s26  ;;  %405 = vrot.lane.b32.xlu1 %v388_v18, %s788_s26 }
 0x118   :  { %411 = vrot.lane.b32.xlu0 %v391_v22, %s788_s26  ;;  %409 = vrot.lane.b32.xlu1 %v390_v11, %s788_s26 }
 0x11c   :  { %415 = vrot.lane.b32.xlu0 %v393_v15, %s788_s26  ;;  %413 = vrot.lane.b32.xlu1 %v392_v16, %s788_s26 }
 0x120   :  { %456 = vperm.xlu0 %635, %v450_v23   ;;  %417 = vrot.lane.b32.xlu1 %v394_v21, %s788_s26 }
 0x124   :  { %461 = vperm.xlu1 %634, %v451_v24  }
 0x132   :  { %v139_v28 = vpop.permute.xlu1 %138 }
 0x136   :  { %v143_v25 = vpop.permute.xlu0 %142  ;;  %v141_v29 = vpop.permute.xlu1 %140 }
 0x137   :  { %v155_v30 = vsel %vm154_vm1, %v139_v28, %v141_v29 }
 0x138   :  { %v163_v26 = vadd.f32 %v155_v30, %v894_v52 }
 0x13a   :  { %v147_v32 = vpop.permute.xlu0 %146  ;;  %v145_v33 = vpop.permute.xlu1 %144 }
 0x13b   :  { %v156_v34 = vsel %vm154_vm1, %v143_v25, %v145_v33 }
 0x13c   :  { %v164_v31 = vadd.f32 %v156_v34, %v882_v44 }
 0x13e   :  { %v151_v35 = vpop.permute.xlu0 %150  ;;  %v149_v36 = vpop.permute.xlu1 %148 }
 0x13f   :  { %v157_v37 = vsel %vm154_vm1, %v147_v32, %v149_v36 }
 0x140   :  { %v953_v38 = vadd.f32 %v157_v37, %v897_v53 }
 0x142   :  { %v192_v39 = vpop.permute.xlu0 %191  ;;  %v153_v40 = vpop.permute.xlu1 %152 }
 0x143   :  { %v158_v41 = vsel %vm154_vm1, %v151_v35, %v153_v40 }
 0x144   :  { %v956_v42 = vadd.f32 %v158_v41, %v885_v45 }
 0x146   :  { %v196_v43 = vpop.permute.xlu0 %195  ;;  %v194_v46 = vpop.permute.xlu1 %193 }
 0x147   :  { %v208_v9 = vsel %vm207_vm2, %v192_v39, %v194_v46 }
 0x148   :  { %v216_v13 = vadd.f32 %v208_v9, %v163_v26 }
 0x14a   :  { %v200_v47 = vpop.permute.xlu0 %199  ;;  %v198_v48 = vpop.permute.xlu1 %197 }
 0x14b   :  { %v209_v10 = vsel %vm207_vm2, %v196_v43, %v198_v48 }
 0x14c   :  { %v217_v11 = vadd.f32 %v209_v10, %v164_v31 }
 0x14e   :  { %v204_v49 = vpop.permute.xlu0 %203  ;;  %v202_v50 = vpop.permute.xlu1 %201 }
 0x14f   :  { %v210_v25 = vsel %vm207_vm2, %v200_v47, %v202_v50 }
 0x150   :  { %v218_v31 = vadd.f32 %v210_v25, %v953_v38 }
 0x152   :  { %v245_v51 = vpop.permute.xlu0 %244  ;;  %v206_v44 = vpop.permute.xlu1 %205 }
 0x153   :  { %v211_v33 = vsel %vm207_vm2, %v204_v49, %v206_v44 }
 0x154   :  { %v219_v43 = vadd.f32 %v211_v33, %v956_v42 }
 0x156   :  { %v249_v52 = vpop.permute.xlu0 %248  ;;  %v247_v54 = vpop.permute.xlu1 %246 }
 0x157   :  { %v261_v12 = vsel %vm260_vm3, %v245_v51, %v247_v54 }
 0x158   :  { %v269_v22 = vadd.f32 %v261_v12, %v216_v13 }
 0x15a   :  { %v253_v55 = vpop.permute.xlu0 %252  ;;  %v251_v56 = vpop.permute.xlu1 %250 }
 0x15b   :  { %v262_v18 = vsel %vm260_vm3, %v249_v52, %v251_v56 }
 0x15c   :  { %v270_v23 = vadd.f32 %v262_v18, %v217_v11 }
 0x15e   :  { %v257_v53 = vpop.permute.xlu0 %256  ;;  %v255_v57 = vpop.permute.xlu1 %254 }
 0x15f   :  { %v263_v34 = vsel %vm260_vm3, %v253_v55, %v255_v57 }
 0x160   :  { %v271_v46 = vadd.f32 %v263_v34, %v218_v31 }
 0x162   :  { %v298_v58 = vpop.permute.xlu0 %297  ;;  %v259_v59 = vpop.permute.xlu1 %258 }
 0x163   :  { %v264_v39 = vsel %vm260_vm3, %v257_v53, %v259_v59 }
 0x164   :  { %v272_v51 = vadd.f32 %v264_v39, %v219_v43 }
 0x166   :  { %v302_v60 = vpop.permute.xlu0 %301  ;;  %v300_v61 = vpop.permute.xlu1 %299 }
 0x167   :  { %v314_v19 = vsel %vm313_vm4, %v298_v58, %v300_v61  ;;  %v636_v58 = vld [vmem:[#allocation8] sm:$0xff]  }
 0x168   :  { %v322_v21 = vadd.f32 %v314_v19, %v269_v22 }
 0x16a   :  { %v306_v45 = vpop.permute.xlu0 %305  ;;  %v304_v62 = vpop.permute.xlu1 %303 }
 0x16b   :  { %v315_v15 = vsel %vm313_vm4, %v302_v60, %v304_v62 }
 0x16c   :  { %v323_v26 = vadd.f32 %v315_v15, %v270_v23 }
 0x16e   :  { %v310_v63 = vpop.permute.xlu0 %309  ;;  %v308_v0 = vpop.permute.xlu1 %307 }
 0x16f   :  { %v316_v40 = vsel %vm313_vm4, %v306_v45, %v308_v0 }
 0x170   :  { %v324_v38 = vadd.f32 %v316_v40, %v271_v46 }
 0x172   :  { %v351_v1 = vpop.permute.xlu0 %350  ;;  %v312_v2 = vpop.permute.xlu1 %311 }
 0x173   :  { %v317_v49 = vsel %vm313_vm4, %v310_v63, %v312_v2 }
 0x174   :  { %v325_v53 = vadd.f32 %v317_v49, %v272_v51 }
 0x176   :  { %v355_v3 = vpop.permute.xlu0 %354  ;;  %v353_v4 = vpop.permute.xlu1 %352 }
 0x177   :  { %v367_v16 = vsel %vm366_vm5, %v351_v1, %v353_v4 }
 0x178   :  { %v375_v32 = vadd.f32 %v367_v16, %v322_v21 }
 0x17a   :  { %v359_v5 = vpop.permute.xlu0 %358  ;;  %v357_v6 = vpop.permute.xlu1 %356 }
 0x17b   :  { %v368_v29 = vsel %vm366_vm5, %v355_v3, %v357_v6 }
 0x17c   :  { %v376_v35 = vadd.f32 %v368_v29, %v323_v26 }
 0x17e   :  { %v363_v7 = vpop.permute.xlu0 %362  ;;  %v361_v8 = vpop.permute.xlu1 %360 }
 0x17f   :  { %v369_v50 = vsel %vm366_vm5, %v359_v5, %v361_v8 }
 0x180   :  { %v377_v42 = vadd.f32 %v369_v50, %v324_v38 }
 0x182   :  { %v404_v14 = vpop.permute.xlu0 %403  ;;  %v365_v17 = vpop.permute.xlu1 %364 }
 0x183   :  { %v370_v55 = vsel %vm366_vm5, %v363_v7, %v365_v17 }
 0x184   :  { %v378_v59 = vadd.f32 %v370_v55, %v325_v53 }
 0x186   :  { %v408_v24 = vpop.permute.xlu0 %407  ;;  %v406_v28 = vpop.permute.xlu1 %405 }
 0x187   :  { %v420_v30 = vsel %vm419_vm6, %v404_v14, %v406_v28 }
 0x188   :  { %v428_v36 = vadd.f32 %v420_v30, %v375_v32 }
 0x18a   :  { %v410_v37 = vpop.permute.xlu1 %409  ;;  %v412_v47 = vpop.permute.xlu0 %411  ;;  %v444_v52 = vadd.f32 %v948_v20, %v428_v36 }
 0x18b   :  { %v421_v41 = vsel %vm419_vm6, %v408_v24, %v410_v37 }
 0x18c   :  { %v429_v48 = vadd.f32 %v421_v41, %v376_v35 }
 0x18e   :  { %v414_v44 = vpop.permute.xlu1 %413  ;;  %v445_v54 = vadd.f32 %v946_v27, %v429_v48  ;;  %v416_v60 = vpop.permute.xlu0 %415 }
 0x18f   :  { %v422_v56 = vsel %vm419_vm6, %v412_v47, %v414_v44 }
 0x190   :  { %v452_v57 = vpack.c.bf16 %v445_v54, %v444_v52  ;;  %v430_v61 = vadd.f32 %v422_v56, %v377_v42 }
 0x192   :  { %v418_v45 = vpop.permute.xlu1 %417  ;;  %587 = vmatpush3.bf16.msra.mxu0 %v452_v57  ;;  %v446_v0 = vadd.f32 %v948_v20, %v430_v61 }
 0x193   :  { %v423_v62 = vsel %vm419_vm6, %v416_v60, %v418_v45 }
 0x194   :  { %v431_v63 = vadd.f32 %v423_v62, %v378_v59 }
 0x195   :  { %589 = vmatmul.mubr.msk.bf16.vlgmr.msra.gmra.mxu0 %vm469_vm7, %v636_v58 }
 0x196   :  { %v447_v1 = vadd.f32 %v946_v27, %v431_v63 }
 0x198   :  { %v453_v2 = vpack.c.bf16 %v447_v1, %v446_v0 }
 0x19a   :  { %593 = vmatpush3.bf16.msra.mxu1 %v453_v2 }
 0x19b   :  { %v457_v3 = vpop.permute.xlu0 %456 }
 0x19d   :  { %595 = vmatmul.mubr.msk.bf16.vlgmr.msra.gmra.mxu1 %vm469_vm7, %v636_v58 }
 0x19f   :  { %v462_v7 = vpop.permute.xlu1 %461 }
 0x255   :  { %v507_v4 = vpop.f32.mrf.mxu0 }
 0x256   :  { %v508_v5 = vadd.f32 %v507_v4, %v457_v3 }
 0x257   :  { %v590_v6 = vpop.f32.mrf.mxu0 }
 0x258   :  { %514 = vst [vmem:[#allocation11] sm:$0xff] %v508_v5 }
 0x259   :  { %v510_v8 = vpop.f32.mrf.mxu0 }
 0x25a   :  { %v511_v9 = vadd.f32 %v510_v8, %v462_v7 }
 0x25b   :  { %v591_v10 = vpop.f32.mrf.mxu0 }
 0x25c   :  { %515 = vst [vmem:[#allocation11 + $0x8] sm:$0xff] %v511_v9 }
 0x25d   :  { %v550_v12 = vpop.f32.mrf.mxu1 }
 0x25e   :  { %v551_v13 = vadd.f32 %v550_v12, %v457_v3 }
 0x25f   :  { %v596_v14 = vpop.f32.mrf.mxu1 }
 0x260   :  { %558 = vst [vmem:[#allocation11 + $0x10] sm:$0xff] %v551_v13 }
 0x261   :  { %v553_v27 = vpop.f32.mrf.mxu1 }
 0x262   :  { %v554_v20 = vadd.f32 %v553_v27, %v462_v7 }
 0x263   :  { %v597_v17 = vpop.f32.mrf.mxu1 }
 0x264   :  { %559 = vst [vmem:[#allocation11 + $0x18] sm:$0xff] %v554_v20 }
 0x265   :  { %748 = shalt.err (!%p745_p1)
}
 0x266   :  { %571 = dma.vmem_to_hbm [thread:$0]  %s566_s28, 512, %s995_s5, [#allocation4], %s766_s21, %s766_s21, %s767_s22  }
 0x267   :  { %763 = dma.done.wait [#allocation4], 512  }
 0x268   :  { %764 = vsyncadd [#allocation4], 4294966784 }
 0x269   :  { %575 = vsyncpa [#allocation3], 1 }
 0x26a   :  { %576 = vsyncpa [#allocation6], 1 }
 0x26b   :  { %577 = vsyncpa [#allocation9], 1 }
 0x26c   :  { %578 = vsyncpa [#allocation4], 1 }

</bundles_post_ra>
